<compile_context>
chip_gen: v7x
topology: tpu7x:2x2x1
jax: 0.10.0
libtpu: 0.0.40
codegen_flags: <defaults>
</compile_context>

<pallas_src>
import functools

import jax
import jax.numpy as jnp
from jax import lax
from jax.experimental import pallas as pl
from jax.experimental.pallas import tpu as pltpu


def _cdiv(a, b):
    return (a + b - 1) // b


def _masked_pool_kernel(emb_ref, mask_ref, out_ref, acc_ref, *, ts, seq_len):
    """Grid = (batch tiles [parallel], sequence tiles [arbitrary]).

    emb_ref : (TB, TS, H)  native dtype  -- hidden-state tile
    mask_ref: (TB, 1, TS)  native dtype  -- attention-mask tile (0 in padded S)
    out_ref : (TB, 1, H)   f32           -- L2-normalized pooled embedding
    acc_ref : (TB, 1, H)   f32 scratch   -- running masked sum
    """
    s = pl.program_id(1)

    @pl.when(s == 0)
    def _init():
        acc_ref[...] = jnp.zeros_like(acc_ref)

    emb = emb_ref[...]                                   # (TB, TS, H)
    if seq_len % ts != 0:
        # Ragged sequence tail: out-of-bounds lanes of the edge block are
        # unspecified (may be NaN); select-zero them so NaN*0 never reaches
        # the MXU accumulator.  Static branch: only emitted when S % TS != 0.
        pos = s * ts + lax.broadcasted_iota(jnp.int32, (1, ts, 1), 1)
        emb = jnp.where(pos < seq_len, emb, jnp.zeros_like(emb))

    # Masked sum over this sequence tile on the MXU, f32 accumulation.
    # (Degenerate M=1 shape is filler under the emb DMA on all generations.)
    acc_ref[...] += jnp.einsum('bqs,bsh->bqh', mask_ref[...], emb,
                               preferred_element_type=jnp.float32)

    @pl.when(s == pl.num_programs(1) - 1)
    def _finalize():
        acc = acc_ref[...]                                # (TB, 1, H) f32
        # L2-normalize.  Scale invariance lets us skip the mask-count divide:
        # normalize(sum/count) == normalize(sum); fully-masked row -> 0 either
        # way (epsilon regime differs slightly from the torch reference, benign).
        sq = jnp.sum(acc * acc, axis=-1, keepdims=True)   # (TB, 1, 1)
        inv = lax.rsqrt(jnp.maximum(sq, 1e-24))           # EUP rsqrt
        out_ref[...] = (acc * inv).astype(out_ref.dtype)


def _emb_block_budget_bytes():
    """Per emb-block streaming budget (Pallas double-buffers it)."""
    try:
        info = pltpu.get_tpu_info()
        vmem_cap = int(getattr(info, "vmem_capacity_bytes", 64 * 1024 * 1024))
    except Exception:  # pragma: no cover - conservative fallback
        vmem_cap = 64 * 1024 * 1024
    # v7x (64 MiB physical VMEM, ~3.2 TB/s HBM): use bigger blocks so the fixed
    # ~0.35us per-grid-step overhead stays negligible; v5e/v6e (128 MiB): 8 MiB.
    return 12 * 1024 * 1024 if vmem_cap <= 64 * 1024 * 1024 else 8 * 1024 * 1024


def _choose_tiles(B, S, H, itemsize, budget):
    """Pick (TB, TS) so each emb block is multi-MiB but within `budget`."""
    row_bytes = S * H * itemsize
    col128_bytes = 128 * H * itemsize
    tb = 8
    # Small hidden dim: fold more batch rows per tile so DMAs stay multi-MiB.
    while tb < 64 and tb < B and 2 * tb * row_bytes <= budget:
        tb *= 2
    # Huge hidden dim: shrink the batch tile instead of relying on the TS floor.
    while tb > 1 and tb * min(row_bytes, col128_bytes) > budget:
        tb //= 2
    tb = min(tb, B)
    # Guarantee >= 2 "parallel" batch tiles whenever B >= 2 so both v7x
    # TensorCores get work (B == 1 would need a sequence-split epilogue; not done).
    if B >= 2:
        tb = min(tb, max(1, B // 2))
    # Sequence tile: largest lane-aligned multiple of 128 within budget, or full S.
    ts = budget // max(1, tb * H * itemsize)
    if ts >= S:
        ts = S
    else:
        ts = max(128, (ts // 128) * 128)
        if ts >= S:
            ts = S
    return int(tb), int(ts)


def mean_pool_l2norm(token_embeddings, attention_mask):
    """token_embeddings: (B, S, H) bf16/f32; attention_mask: (B, S) int/bool.

    Returns (B, H) f32, matching
        F.normalize(mean_pooling(token_embeddings, attention_mask), p=2, dim=1)
    """
    B, S, H = token_embeddings.shape
    emb_dtype = token_embeddings.dtype
    itemsize = jnp.dtype(emb_dtype).itemsize

    budget = _emb_block_budget_bytes()
    TB, TS = _choose_tiles(B, S, H, itemsize, budget)
    n_b = _cdiv(B, TB)
    n_s = _cdiv(S, TS)
    S_ceil = n_s * TS

    # Hidden states are streamed in place (no full-tensor pad/copy).  Only the
    # tiny mask is materialized: lane-major (B, 1, S_ceil) in the embedding
    # dtype (exact for 0/1 masks); padded sequence positions get mask 0.
    mask = attention_mask.astype(emb_dtype).reshape(B, 1, S)
    if S_ceil != S:
        mask = jnp.pad(mask, ((0, 0), (0, 0), (0, S_ceil - S)))

    kernel = functools.partial(_masked_pool_kernel, ts=TS, seq_len=S)

    # Scoped-VMEM footprint: double-buffered inputs/outputs + f32 accumulator.
    lane = lambda n: max(128, _cdiv(n, 128) * 128)
    sub = lambda n: max(8, _cdiv(n, 8) * 8)
    emb_blk = TB * sub(TS) * lane(H) * itemsize
    mask_blk = TB * 8 * lane(TS) * itemsize
    out_blk = TB * 8 * lane(H) * 4
    need = 2 * emb_blk + 2 * mask_blk + 3 * out_blk
    vmem_limit = int(min(max(need + (4 << 20), 16 << 20), 40 << 20))

    out = pl.pallas_call(
        kernel,
        out_shape=jax.ShapeDtypeStruct((B, 1, H), jnp.float32),
        grid_spec=pltpu.PrefetchScalarGridSpec(
            num_scalar_prefetch=0,
            grid=(n_b, n_s),
            in_specs=[
                pl.BlockSpec((TB, TS, H), lambda b, s: (b, s, 0)),
                pl.BlockSpec((TB, 1, TS), lambda b, s: (b, 0, s)),
            ],
            out_specs=pl.BlockSpec((TB, 1, H), lambda b, s: (b, 0, 0)),
            scratch_shapes=[pltpu.VMEM((TB, 1, H), jnp.float32)],
        ),
        compiler_params=pltpu.CompilerParams(
            dimension_semantics=("parallel", "arbitrary"),
            vmem_limit_bytes=vmem_limit,
        ),
        cost_estimate=pl.CostEstimate(
            flops=int(2 * B * S * H),
            transcendentals=int(B),
            bytes_accessed=int(B * S * H * itemsize
                               + B * S_ceil * itemsize
                               + B * H * 4),
        ),
    )(token_embeddings, mask)

    return out.reshape(B, H)


class LLMModelPallas:
    """Synthetic stand-in for ggfm LLMModel (small hidden dim for the demo)."""

    def __init__(self, hidden_dim=32, vocab_size=100, key=None):
        if key is None:
            key = jax.random.PRNGKey(0)
        self.indim = hidden_dim
        # Deterministic bf16 stand-in for the LLM's last-hidden-state producer
        # (real LLM hidden states would also live in bf16 in HBM).
        self.embed_table = (
            jax.random.normal(key, (vocab_size, hidden_dim), dtype=jnp.float32)
            * 0.02
        ).astype(jnp.bfloat16)

    def _hidden_states(self, input_ids):
        # glue: deterministic embedding lookup standing in for the transformer
        return jnp.take(self.embed_table, input_ids, axis=0)  # (B, S, H) bf16

    def forward(self, text_tokens):
        hidden = self._hidden_states(text_tokens["input_ids"])
        return mean_pool_l2norm(hidden, text_tokens["attention_mask"])


def _reference(token_embeddings, attention_mask):
    """Pure-JAX reference mirroring the PyTorch code exactly."""
    te = token_embeddings.astype(jnp.float32)
    m = attention_mask[..., None].astype(jnp.float32)
    pooled = jnp.sum(te * m, axis=1) / jnp.clip(jnp.sum(m, axis=1), 1e-10)
    norm = jnp.maximum(
        jnp.sqrt(jnp.sum(pooled * pooled, axis=1, keepdims=True)), 1e-12
    )
    return pooled / norm


if __name__ == "__main__":
    key = jax.random.PRNGKey(0)
    k_emb, k_ids = jax.random.split(key)

    B, S, H, V = 2, 8, 32, 100
    model = LLMModelPallas(hidden_dim=H, vocab_size=V, key=k_emb)

    input_ids = jax.random.randint(k_ids, (B, S), 0, V, dtype=jnp.int32)
    # row 0: all tokens valid; row 1: last 3 positions are padding
    attention_mask = jnp.array(
        [[1, 1, 1, 1, 1, 1, 1, 1],
         [1, 1, 1, 1, 1, 0, 0, 0]], dtype=jnp.int32
    )
    text_tokens = {"input_ids": input_ids, "attention_mask": attention_mask}

    out = model.forward(text_tokens)
    out = jax.block_until_ready(out)

    ref = _reference(model._hidden_states(input_ids), attention_mask)
    assert out.shape == (B, H)
    assert jnp.allclose(out, ref, atol=2e-5, rtol=1e-4), (
        float(jnp.max(jnp.abs(out - ref))))

    print("KERNEL_OK")
</pallas_src>

<mosaic_0001>
module attributes {stable_mosaic.version = 11 : i64} {
  func.func @_masked_pool_kernel(%arg0: i32, %arg1: i32, %arg2: memref<1x8x32xbf16, #tpu.memory_space<vmem>>, %arg3: memref<1x1x8xbf16, #tpu.memory_space<vmem>>, %arg4: memref<1x1x32xf32, #tpu.memory_space<vmem>>, %arg5: memref<1x1x32xf32, #tpu.memory_space<vmem>>) attributes {dimension_semantics = [#tpu.dimension_semantics<parallel>, #tpu.dimension_semantics<arbitrary>], iteration_bounds = array<i64: 2, 1>, scalar_prefetch = 0 : i64, scratch_operands = 1 : i64, tpu.core_type = #tpu.core_type<tc>, window_params = [{transform_indices = @transform_0, window_bounds = array<i64: 1, 8, 32>}, {transform_indices = @transform_1, window_bounds = array<i64: 1, 1, 8>}, {transform_indices = @transform_2, window_bounds = array<i64: 1, 1, 32>}]} {
    %c0_i32 = arith.constant 0 : i32
    %0 = arith.cmpi eq, %arg1, %c0_i32 : i32
    %1 = arith.extui %0 : i1 to i32
    %c0_i32_0 = arith.constant 0 : i32
    %2 = arith.cmpi ne, %1, %c0_i32_0 : i32
    scf.if %2 {
      %cst_14 = arith.constant 0.000000e+00 : f32
      %12 = vector.broadcast %cst_14 : f32 to vector<1x1x32xf32>
      %c0_15 = arith.constant 0 : index
      %c0_16 = arith.constant 0 : index
      %c0_17 = arith.constant 0 : index
      %13 = vector.load %arg5[%c0_15, %c0_16, %c0_17] : memref<1x1x32xf32, #tpu.memory_space<vmem>>, vector<1x1x32xf32>
      tpu.vector_store %arg5[%c0_15, %c0_16, %c0_17], %12 {strides = array<i32>} : memref<1x1x32xf32, #tpu.memory_space<vmem>>, vector<1x1x32xf32>,
    } else {
    }
    %c0 = arith.constant 0 : index
    %c0_1 = arith.constant 0 : index
    %c0_2 = arith.constant 0 : index
    %3 = vector.load %arg2[%c0, %c0_1, %c0_2] : memref<1x8x32xbf16, #tpu.memory_space<vmem>>, vector<1x8x32xbf16>
    %c0_3 = arith.constant 0 : index
    %c0_4 = arith.constant 0 : index
    %c0_5 = arith.constant 0 : index
    %4 = vector.load %arg5[%c0_3, %c0_4, %c0_5] : memref<1x1x32xf32, #tpu.memory_space<vmem>>, vector<1x1x32xf32>
    %c0_6 = arith.constant 0 : index
    %c0_7 = arith.constant 0 : index
    %c0_8 = arith.constant 0 : index
    %5 = vector.load %arg3[%c0_6, %c0_7, %c0_8] : memref<1x1x8xbf16, #tpu.memory_space<vmem>>, vector<1x1x8xbf16>
    "tpu.trace_start"() <{level = 10 : i32, message = "bqs,bsh->bqh"}> : () -> ()
    %cst = arith.constant dense<0.000000e+00> : vector<1x1x32xf32>
    %6 = tpu.matmul %5, %3, %cst {dimension_numbers = #tpu.dot_dimension_numbers<[2], [1], [1], [2], [0, 0, 0, 1, 1, 2], [0], [0]>} : vector<1x1x8xbf16>, vector<1x8x32xbf16>, vector<1x1x32xf32> -> vector<1x1x32xf32>
    "tpu.trace_stop"() : () -> ()
    %7 = arith.addf %4, %6 : vector<1x1x32xf32>
    %c0_9 = arith.constant 0 : index
    %c0_10 = arith.constant 0 : index
    %c0_11 = arith.constant 0 : index
    %8 = vector.load %arg5[%c0_9, %c0_10, %c0_11] : memref<1x1x32xf32, #tpu.memory_space<vmem>>, vector<1x1x32xf32>
    tpu.vector_store %arg5[%c0_9, %c0_10, %c0_11], %7 {strides = array<i32>} : memref<1x1x32xf32, #tpu.memory_space<vmem>>, vector<1x1x32xf32>,
    %c0_i32_12 = arith.constant 0 : i32
    %9 = arith.cmpi eq, %arg1, %c0_i32_12 : i32
    %10 = arith.extui %9 : i1 to i32
    %c0_i32_13 = arith.constant 0 : i32
    %11 = arith.cmpi ne, %10, %c0_i32_13 : i32
    scf.if %11 {
      %c0_14 = arith.constant 0 : index
      %c0_15 = arith.constant 0 : index
      %c0_16 = arith.constant 0 : index
      %12 = vector.load %arg5[%c0_14, %c0_15, %c0_16] : memref<1x1x32xf32, #tpu.memory_space<vmem>>, vector<1x1x32xf32>
      %13 = arith.mulf %12, %12 : vector<1x1x32xf32>
      %cst_17 = arith.constant dense<0.000000e+00> : vector<1x1xf32>
      %14 = vector.multi_reduction <add>, %13, %cst_17 [2] : vector<1x1x32xf32> to vector<1x1xf32>
      %15 = vector.shape_cast %14 : vector<1x1xf32> to vector<1x1x1xf32>
      %cst_18 = arith.constant 1.000000e-24 : f32
      %16 = vector.broadcast %cst_18 : f32 to vector<1x1x1xf32>
      %17 = arith.maximumf %15, %16 : vector<1x1x1xf32>
      %18 = math.rsqrt %17 : vector<1x1x1xf32>
      %19 = vector.broadcast %18 : vector<1x1x1xf32> to vector<1x1x32xf32>
      %20 = arith.mulf %12, %19 : vector<1x1x32xf32>
      %c0_19 = arith.constant 0 : index
      %c0_20 = arith.constant 0 : index
      %c0_21 = arith.constant 0 : index
      %21 = vector.load %arg4[%c0_19, %c0_20, %c0_21] : memref<1x1x32xf32, #tpu.memory_space<vmem>>, vector<1x1x32xf32>
      tpu.vector_store %arg4[%c0_19, %c0_20, %c0_21], %20 {strides = array<i32>} : memref<1x1x32xf32, #tpu.memory_space<vmem>>, vector<1x1x32xf32>,
    } else {
    }
    return
  }
  func.func @transform_0(%arg0: i32, %arg1: i32) -> (i32, i32, i32) {
    %c0_i32 = arith.constant 0 : i32
    %c0_i32_0 = arith.constant 0 : i32
    return %arg0, %arg1, %c0_i32 : i32, i32, i32
  }
  func.func @transform_1(%arg0: i32, %arg1: i32) -> (i32, i32, i32) {
    %c0_i32 = arith.constant 0 : i32
    %c0_i32_0 = arith.constant 0 : i32
    return %arg0, %c0_i32, %arg1 : i32, i32, i32
  }
  func.func @transform_2(%arg0: i32, %arg1: i32) -> (i32, i32, i32) {
    %c0_i32 = arith.constant 0 : i32
    %c0_i32_0 = arith.constant 0 : i32
    %c0_i32_1 = arith.constant 0 : i32
    return %arg0, %c0_i32, %c0_i32_0 : i32, i32, i32
  }
}

</mosaic_0001>

<bundles_post_ra>
// kernel: tpu_custom_call.1
= control target key start
LH: loop header
LB: loop body
LE: loop exit
PB: predicated region body
PF: predicated region fallthrough
CT: control target
= control target key end

     0   :  { %7 = vsyncpa [#allocation4], 0  ;;  %s772_s0 = inlined_call_operand.hbm [shape: bf16[2,8,32], index: 0, kind: input, shape index: {}]   ;;  %s773_s1 = inlined_call_operand.vmem [shape: bf16[2,1,8], index: 1, kind: input, shape index: {}]   ;;  %s774_s2 = inlined_call_operand.hbm [shape: f32[2,1,32], index: 2, kind: output, shape index: {}]  }
   0x1   :  { %9 = vsyncpa [#allocation4 + $0x1], 0 }
   0x2   :  { %10 = vsyncpa [#allocation5], 0 }
   0x3   :  { %12 = vsyncpa [#allocation5 + $0x1], 0  ;;  %s590_s9 = smov 0   ;;  %s592_s10 = smov 0  }
   0x4   :  { %s594_s11 = smov 0   ;;  %s596_s12 = smov 0  }
   0x5   :  { %s598_s13 = smov 0   ;;  %s600_s14 = smov 0  }
   0x6 LB: > { %s371_s15 = sadd.s32 4294967295, %s569_s14   ;;  %s372_s16 = sadd.s32 4294967294, %s569_s14   ;;  %s569_s14 = sphi %s600_s14, %s18_s14   ;;  %s565_s13 = sphi %s598_s13, %s790_s13   ;;  %s561_s12 = sphi %s596_s12, %s789_s12   ;;  %s557_s11 = sphi %s594_s11, %s788_s11   ;;  %s553_s10 = sphi %s592_s10, %s787_s10   ;;  %s549_s9 = sphi %s590_s9, %s786_s9  }
   0x7   : > { %s30_s17 = sadd.s32 1, %s565_s13  ;;  %s39_s18 = sadd.s32 1, %s557_s11 }
   0x8   : > { %p32_p0 = scmp.ge.s32.totalorder %s30_s17, 2  ;;  %p46_p1 = scmp.ne.s32.totalorder %s557_s11, %s553_s10 }
   0x9   : > { %p47_p2 = scmp.eq.s32.totalorder %s569_s14, 0  ;;  %p52_p3 = scmp.ne.s32.totalorder %s553_s10, %s549_s9 }
   0xa   : > { %s792_s17 = smov (%p32_p0, %s30_s17), 0  ;;  %p53_p5 = scmp.eq.s32.totalorder %s371_s15, 0 }
   0xb   : > { %p631_p4 = por %p47_p2, %p46_p1  ;;  %s34_s20 = ssub.s32 %s565_s13, %s792_s17 }
   0xc   : > { %p104_p6 = scmp.eq.s32.totalorder %s371_s15, 1  ;;  %p37_p7 = scmp.eq.s32.totalorder %s34_s20, 0 }
   0xd   : > { %p637_p8 = por %p53_p5, %p52_p3  ;;  %p110_p10 = scmp.eq.s32.totalorder %s372_s16, 1 }
   0xe   : > { %p641_p9 = por %p104_p6, %p46_p1  ;;  %p403_p13 = scmp.lt.s32.totalorder %s569_s14, 2 }
   0xf   : > { %s646_s23 = scalar_select %p37_p7, %s557_s11, %s39_s18  }
  0x10   : > { %s778_s22 = scalar_select %p641_p9, 1, 0 }
  0x11   : > { %p648_p11 = por %p110_p10, %p52_p3  ;;  %s130_s25 = sand.u32 1, %s557_s11  }
  0x12   : > { %s375_s26 = sshll.u32 %s130_s25, 2  ;;  %s376_s27 = sshll.u32 %s565_s13, 6 }
  0x13   : > { %s779_s24 = scalar_select %p648_p11, 1, 0 }
  0x14   : > { %s659_s30 = scalar_lea.hbm %s772_s0, %s376_s27  ;;  %s134_s3 = scalar_lea.vmem [#allocation3], %s375_s26 }
  0x15   : > { %s142_s4 = sshll.u32 %s134_s3, 4  ;;  %p665_p0 = pnand %p403_p13, %p631_p4  ;;  %s661_s4 = int_to_ptr.vmem [resolvable:$true] %s142_s4 }
  0x16   : > { %s131_s6 = scalar_lea.sflag [#allocation4], %s130_s25  ;;  %s457_s7 = scalar_lea.hbm %s659_s30, 64 }
  0x17   : > { %p458_p3 = scmp.ne.s32.totalorder %s659_s30, %s457_s7  ;;  %p459_p5 = pneg %p665_p0 }
  0x18   : > { %s462_s16 = scalar_lea.hbm %s772_s0, 128  ;;  %p463_p4 = scmp.lt.u32.totalorder %s659_s30, %s772_s0 }
  0x19   : > { %p460_p6 = pnand %p459_p5, %p458_p3  ;;  %p464_p10 = scmp.lt.u32.totalorder %s462_s16, %s457_s7 }
  0x1a   : > { %p466_p12 = scmp.lt.u32.totalorder %s457_s7, %s659_s30 }
  0x1b   : > { %p461_p7 = pneg %p460_p6  ;;  %p465_p13 = por %p464_p10, %p463_p4 }
  0x1d   : > { %p467_p1 = por %p466_p12, %p465_p13 }
  0x1f   : > { %p468_p2 = pnand %p467_p1, %p461_p7 }
  0x21   : > { %471 = shalt.err (!%p468_p2)
}
  0x22   : > { %s472_s20 = scalar_lea.vmem %s661_s4, 64  ;;  %s571_s25 = smov [#allocation3]  }
  0x23   : > { %p473_p3 = scmp.ne.s32.totalorder %s661_s4, %s472_s20  ;;  %s477_s26 = sshll.u32 %s571_s25, 4  ;;  %s478_s26 = int_to_ptr.vmem [resolvable:$false] %s477_s26 }
  0x24   : > { %s479_s27 = scalar_lea.vmem %s478_s26, 128  ;;  %p480_p9 = scmp.lt.s32.totalorder %s661_s4, %s478_s26 }
  0x25   : > { %p475_p6 = pnand %p473_p3, %p459_p5  ;;  %p481_p4 = scmp.lt.s32.totalorder %s479_s27, %s472_s20 }
  0x27   : > { %p476_p11 = pneg %p475_p6  ;;  %p482_p10 = por %p481_p4, %p480_p9 }
  0x29   : > { %p483_p12 = pnand %p482_p10, %p476_p11 }
  0x2b   : > { %486 = shalt.err (!%p483_p12)
}
  0x2c   : > { %398 = dma.hbm_to_vmem [thread:$0]  (!%p665_p0), %s659_s30, 64, %s661_s4, %s131_s6  }
  0x2d   : > { %p781_p1 = scmp.lt.s32.totalorder %s569_s14, 3  ;;  %p782_p2 = scmp.ge.s32.totalorder %s569_s14, 1 }
  0x2f   : > { %p157_p5 = pnand %p782_p2, %p781_p1 }
  0x30   : > { %s701_s28 = sand.u32 (!%p157_p5), 1, %s553_s10  }
  0x31   : > { %160 = sbr.rel (%p157_p5) target bundleno = 459 (0x1cb), region = 28  ;;  %s378_s29 = sshll.u32 (!%p157_p5), %s701_s28, 2 }
  0x32   : > { %s163_s3 = scalar_lea.sflag (!%p157_p5), [#allocation4], %s701_s28  ;;  %s166_s7 = scalar_lea.vmem (!%p157_p5), [#allocation3], %s378_s29 }
  0x38   : > { %540 = dma.done.wait (%p637_p8), %s163_s3, 64  }
  0x39   : > { %542 = vsyncadd (%p637_p8), %s163_s3, 4294967232  ;;  %p192_p9 = scmp.lt.s32.totalorder %s561_s12, 1  ;;  %v572_v0 = vmov 0.0   ;;  %vm573_vm0 = vmmov 0   ;;  %vm203_vm1 = vcmask 253952   ;;  %vm212_vm2 = vcmask 1043456  }
  0x3a   : > { %385 = vmatprep.subr.bf16.mxu0 %v572_v0  ;;  %387 = vmatprep.mubr.msk.bf16.mxu0 %vm573_vm0, %v572_v0  ;;  %204 = vst.msk [vmem:[#allocation2] sm:$0x1] %vm203_vm1, %v572_v0  ;;  %v205_v1 = vld [vmem:[%s166_s7] sm:$0xf]  ;;  %vm208_vm3 = vcmask 64512   ;;  %s380_s21 = sshll.u32 %s561_s12, 4 }
  0x3b   : > { %s193_s30 = scalar_select %p192_p9, %s561_s12, 1  ;;  %v214_v2 = vsel %vm212_vm2, %v205_v1, 0 }
  0x3c   : > { %386 = vmatpush3.bf16.msra.mxu0 %v214_v2  ;;  %s191_s8 = scalar_lea.vmem [#allocation6], %s701_s28  ;;  %s722_s19 = scalar_lea.hbm %s774_s2, %s380_s21 }
  0x3d   : > { %s197_s6 = scalar_lea.vmem %s773_s1, %s193_s30  ;;  %s284_s15 = sshll.u32 %s191_s8, 4  ;;  %s724_s15 = int_to_ptr.vmem [resolvable:$true] %s284_s15 }
  0x3e   : > { %v207_v3 = vld [vmem:[%s197_s6] sm:$0x1]  ;;  %s272_s20 = scalar_lea.sflag [#allocation5], %s701_s28  ;;  %s487_s25 = scalar_lea.vmem %s724_s15, 16 }
  0x3f   : > { %388 = vmatmul.mubr.msk.bf16.vlgmr.msra.gmra.mrb[0].mxu0 %vm208_vm3, %v207_v3  ;;  %p488_p8 = scmp.ne.s32.totalorder %s724_s15, %s487_s25  ;;  %p783_p11 = scmp.ne.s32.totalorder %s778_s22, 0 }
  0x40   : > { %s574_s12 = smov [#allocation6]  }
  0x41   : > { %v206_v4 = vld [vmem:[#allocation2] sm:$0x1]  ;;  %p489_p0 = pnand %p488_p8, %p783_p11  ;;  %s491_s26 = sshll.u32 %s574_s12, 4  ;;  %s492_s26 = int_to_ptr.vmem [resolvable:$false] %s491_s26 }
  0x42   : > { %s493_s27 = scalar_lea.vmem %s492_s26, 32  ;;  %p494_p13 = scmp.lt.s32.totalorder %s724_s15, %s492_s26 }
  0x43   : > { %p490_p7 = pneg %p489_p0  ;;  %p495_p3 = scmp.lt.s32.totalorder %s493_s27, %s487_s25 }
  0x45   : > { %p496_p6 = por %p495_p3, %p494_p13 }
  0x47   : > { %p497_p4 = pnand %p496_p6, %p490_p7 }
 0x112   : > { %v250_v5 = vpop.f32.mrb[0].mxu0 }
 0x113   : > { %v256_v6 = vadd.f32 %v250_v5, %v206_v4  ;;  %v389_v7 = vpop.f32.mrb[1].mxu0 }
 0x114   : > { %v253_v8 = vpop.f32.mrb[2].mxu0 }
 0x115   : > { %258 = vst.msk [vmem:[#allocation2] sm:$0x1] %vm203_vm1, %v256_v6  ;;  %v390_v9 = vpop.f32.mrb[3].mxu0 }
 0x11c   : > { %v262_v10 = vld [vmem:[#allocation2] sm:$0x1] }
 0x11d   : > { %v263_v11 = vmul.f32 %v262_v10, %v262_v10 }
 0x11f   : > { %v264_v12 = vsel %vm203_vm1, %v263_v11, 0.0 }
 0x120   : > { %265 = vadd.xlane.f32.xlu0 %v264_v12 }
 0x1ad   : > { %v266_v13 = vpop.xlane.xlu0 %265 }
 0x1ae   : > { %v267_v14 = vmax.f32 %v266_v13, 1e-24 }
 0x1b0   : > { %455 = vrsqrt.f32 %v267_v14 }
 0x1ba   : > { %v456_v15 = vpop.eup %455 }
 0x1bb   : > { %v269_v16 = vmul.f32 %v456_v15, %v262_v10 }
 0x1bd   : > { %270 = vst.msk [vmem:[%s191_s8] sm:$0x1] %vm203_vm1, %v269_v16 }
 0x1be   : > { %500 = shalt.err (!%p497_p4)
}
 0x1bf   : > { %s501_s28 = scalar_lea.hbm %s722_s19, 16  ;;  %s505_s7 = scalar_lea.hbm %s774_s2, 32 }
 0x1c0   : > { %p502_p10 = scmp.ne.s32.totalorder %s722_s19, %s501_s28  ;;  %p506_p2 = scmp.lt.u32.totalorder %s722_s19, %s774_s2 }
 0x1c1   : > { %p507_p5 = scmp.lt.u32.totalorder %s505_s7, %s501_s28  ;;  %p509_p8 = scmp.lt.u32.totalorder %s501_s28, %s722_s19 }
 0x1c2   : > { %p503_p12 = pnand %p502_p10, %p783_p11 }
 0x1c3   : > { %p508_p9 = por %p507_p5, %p506_p2 }
 0x1c4   : > { %p504_p1 = pneg %p503_p12 }
 0x1c5   : > { %p510_p0 = por %p509_p8, %p508_p9 }
 0x1c7   : > { %p511_p7 = pnand %p510_p0, %p504_p1 }
 0x1c9   : > { %514 = shalt.err (!%p511_p7)
}
 0x1ca   : > { %393 = dma.vmem_to_hbm [thread:$0]  (%p783_p11), %s724_s15, 16, %s722_s19, %s272_s20  }
 0x1cb PF: > { %s296_s5 = sand.u32 1, %s549_s9   ;;  %p784_p13 = scmp.ne.s32.totalorder %s779_s24, 0 }
 0x1cc   : > { %p785_p3 = scmp.ge.s32.totalorder %s569_s14, 2  ;;  %s297_s6 = scalar_lea.sflag [#allocation5], %s296_s5 }
 0x1ce   : > { %p400_p6 = pnand %p785_p3, %p784_p13 }
 0x1d0   : > { %544 = dma.done.wait (!%p400_p6), %s297_s6, 16  }
 0x1d1   : > { %546 = vsyncadd (!%p400_p6), %s297_s6, 4294967280  ;;  %s18_s14 = sadd.s32 1, %s569_s14   ;;  %s786_s9 = smov %s553_s10 }
 0x1d2   : > { %p15_p4 = scmp.ge.s32.totalorder %s18_s14, 4   ;;  %s787_s10 = smov %s557_s11 }
 0x1d3   : > { %s788_s11 = smov %s646_s23  ;;  %s789_s12 = smov %s565_s13 }
 0x1d4   : > { %s790_s13 = smov %s792_s17  ;;  %17 = sbr.rel (!%p15_p4) target bundleno = 6 (0x6), region = 84 }
 0x1db   :  { %301 = vsyncpa [#allocation4], 1 }
 0x1dc   :  { %303 = vsyncpa [#allocation4 + $0x1], 1 }
 0x1dd   :  { %304 = vsyncpa [#allocation5], 1 }
 0x1de   :  { %306 = vsyncpa [#allocation5 + $0x1], 1 }

</bundles_post_ra>
